<compile_context>
chip_gen: v7x
topology: tpu7x:2x2x1
jax: 0.10.0
libtpu: 0.0.40
codegen_flags: <defaults>
</compile_context>

<pallas_src>
import functools

import jax
import jax.numpy as jnp
from jax.experimental import pallas as pl
from jax.experimental.pallas import tpu as pltpu

INPUT_SIZE = 8        # args.input_size
HIDDEN_SIZE = 32      # args.hidden_size
OUTPUT_SIZE = 1       # args.output_size (module requires 1)
LN_EPS = 1e-5         # PyTorch nn.LayerNorm default eps
# acti_name = 'relu', end_norm = 'softmax', hidden_layer_num = 3

_I = INPUT_SIZE
_H = HIDDEN_SIZE

# Column indices inside the per-feature vector slab of shape (H, 8).
_C_W2, _C_B0, _C_G0, _C_BE0, _C_B1, _C_G1, _C_BE1, _C_PAD = range(8)


def _dnn_kernel(x_ref, w0t_ref, w1t_ref, vec_ref, b2_ref, out_ref, *, bt):
    # x_ref:   (bt, I, K) — bt batch rows, kspace on lanes
    # w0t_ref: (H, I)     — pre-centered w0^T, lane-0 aligned MXU operand
    # w1t_ref: (H, H)     — pre-centered w1^T, lane-0 aligned MXU operand
    # vec_ref: (H, 8)     — [w2, b0c, g0, be0, b1c, g1, be1, pad] column vectors
    # b2_ref:  (1,)       — scalar bias of the final Linear, in SMEM
    # out_ref: (bt, K)    — lane-dense post-softmax prediction rows
    w0t = w0t_ref[...]
    w1t = w1t_ref[...]
    w2c = vec_ref[:, _C_W2:_C_W2 + 1]        # (H, 1)
    b0c = vec_ref[:, _C_B0:_C_B0 + 1]
    g0 = vec_ref[:, _C_G0:_C_G0 + 1]
    be0 = vec_ref[:, _C_BE0:_C_BE0 + 1]
    b1c = vec_ref[:, _C_B1:_C_B1 + 1]
    g1 = vec_ref[:, _C_G1:_C_G1 + 1]
    be1 = vec_ref[:, _C_BE1:_C_BE1 + 1]
    b2 = b2_ref[0]

    rows = []
    for b in range(bt):                      # static unroll over the batch tile
        x = x_ref[b]                         # (I, K) f32

        # hidden0: Linear(I->H) + LayerNorm(H) + ReLU.  Weights/bias are
        # pre-centered, so the pre-activation is analytically zero-mean over H
        # and LayerNorm collapses to a single rsqrt(mean(h^2)+eps) scaling.
        h = jnp.dot(w0t, x, preferred_element_type=jnp.float32) + b0c      # (H, K)
        var = jnp.mean(h * h, axis=0, keepdims=True)
        h = h * jax.lax.rsqrt(var + LN_EPS) * g0 + be0
        h = jnp.maximum(h, 0.0)

        # hidden1: Linear(H->H) + LayerNorm(H) + ReLU (same pre-centering trick)
        h = jnp.dot(w1t, h, preferred_element_type=jnp.float32) + b1c      # (H, K)
        var = jnp.mean(h * h, axis=0, keepdims=True)
        h = h * jax.lax.rsqrt(var + LN_EPS) * g1 + be1
        h = jnp.maximum(h, 0.0)

        # hidden2: Linear(H->1) off the MXU (VPU multiply + sublane reduce),
        # plus residual of the last input feature  input[:, -1, k].
        y = jnp.sum(h * w2c, axis=0, keepdims=True) + b2 + x[_I - 1:_I, :]  # (1, K)
        rows.append(y)

    y_all = jnp.concatenate(rows, axis=0)    # (bt, K)

    # fused end_norm = softmax over the kspace (lane) axis
    m = jnp.max(y_all, axis=-1, keepdims=True)
    e = jnp.exp(y_all - m)
    s = jnp.sum(e, axis=-1, keepdims=True)
    inv = pl.reciprocal(s, approx=True)      # EUP slot (free vs the VALU divide)
    inv = inv * (2.0 - s * inv)              # one NR step -> ~full f32 accuracy
    out_ref[...] = e * inv


def init_params(key):
    ks = jax.random.split(key, 6)
    w0 = jax.random.normal(ks[0], (INPUT_SIZE, HIDDEN_SIZE), jnp.float32) * 0.2
    b0 = jax.random.normal(ks[1], (1, HIDDEN_SIZE), jnp.float32) * 0.05
    g0 = jnp.ones((1, HIDDEN_SIZE), jnp.float32)
    be0 = jnp.zeros((1, HIDDEN_SIZE), jnp.float32)
    w1 = jax.random.normal(ks[2], (HIDDEN_SIZE, HIDDEN_SIZE), jnp.float32) * 0.2
    b1 = jax.random.normal(ks[3], (1, HIDDEN_SIZE), jnp.float32) * 0.05
    g1 = jnp.ones((1, HIDDEN_SIZE), jnp.float32)
    be1 = jnp.zeros((1, HIDDEN_SIZE), jnp.float32)
    w2 = jax.random.normal(ks[4], (HIDDEN_SIZE, OUTPUT_SIZE), jnp.float32) * 0.2
    b2 = jax.random.normal(ks[5], (1, OUTPUT_SIZE), jnp.float32) * 0.05
    return (w0, b0, g0, be0, w1, b1, g1, be1, w2, b2)


def pack_params(params):
    """Pre-center the LayerNorm inputs and pack lane-0-aligned kernel operands.

    h_j = sum_i x_i W[i, j] + b_j; subtracting the per-row mean over j (the LN
    axis) from W and mean(b) from b makes mean_j h_j == 0 for ANY input, so the
    kernel can drop the LN mean reduction entirely.  Call ONCE at init.
    """
    w0, b0, g0, be0, w1, b1, g1, be1, w2, b2 = params
    w0c = w0 - jnp.mean(w0, axis=1, keepdims=True)
    b0c = b0 - jnp.mean(b0)
    w1c = w1 - jnp.mean(w1, axis=1, keepdims=True)
    b1c = b1 - jnp.mean(b1)

    w0t = jnp.asarray(w0c.T, jnp.float32)                      # (H, I)
    w1t = jnp.asarray(w1c.T, jnp.float32)                      # (H, H)
    vecs = jnp.stack(
        [w2.reshape(_H), b0c.reshape(_H), g0.reshape(_H), be0.reshape(_H),
         b1c.reshape(_H), g1.reshape(_H), be1.reshape(_H),
         jnp.zeros((_H,), jnp.float32)],
        axis=1).astype(jnp.float32)                            # (H, 8)
    b2s = jnp.asarray(b2, jnp.float32).reshape(1)              # (1,) -> SMEM
    return w0t, w1t, vecs, b2s


@jax.jit
def dnn_forward(x, w0t, w1t, vecs, b2s):
    """x: (B, input_size, K) f32 -> (B, 1, K) f32 (softmax over K)."""
    B, I_, K = x.shape
    assert I_ == INPUT_SIZE and OUTPUT_SIZE == 1

    # Batch tiling: Bt rows per grid step (dense output stores, amortized
    # per-step overhead).  Pad B to a multiple of 8 when B >= 8.
    if B >= 8:
        bt = 8
        b_pad = ((B + 7) // 8) * 8
        if b_pad != B:
            x = jnp.pad(x, ((0, b_pad - B), (0, 0), (0, 0)))
    else:
        bt = B
        b_pad = B
    grid = (b_pad // bt,)

    flops = 2 * b_pad * K * (_I * _H + _H * _H + _H) + 16 * b_pad * K
    transcendentals = 3 * b_pad * K                 # exp + 2x rsqrt per k-point
    bytes_accessed = (4 * (b_pad * _I * K + b_pad * K)
                      + 4 * (_H * _I + _H * _H + _H * 8 + 1))

    # Full-K blocks: bump the scoped VMEM limit if the (H,K) intermediates need it.
    need = (4 * (2 * bt * _I * K + 2 * bt * K + 6 * _H * K)
            + 4 * _H * (_I + _H + 8))
    vmem_limit = int(min(64 * 2 ** 20, max(32 * 2 ** 20, 2 * need)))

    out = pl.pallas_call(
        functools.partial(_dnn_kernel, bt=bt),
        out_shape=jax.ShapeDtypeStruct((b_pad, K), jnp.float32),
        grid_spec=pltpu.PrefetchScalarGridSpec(
            num_scalar_prefetch=0,
            grid=grid,
            in_specs=[
                pl.BlockSpec((bt, INPUT_SIZE, K), lambda i: (i, 0, 0)),
                pl.BlockSpec((HIDDEN_SIZE, INPUT_SIZE), lambda i: (0, 0)),
                pl.BlockSpec((HIDDEN_SIZE, HIDDEN_SIZE), lambda i: (0, 0)),
                pl.BlockSpec((HIDDEN_SIZE, 8), lambda i: (0, 0)),
                pl.BlockSpec(memory_space=pltpu.MemorySpace.SMEM),
            ],
            out_specs=pl.BlockSpec((bt, K), lambda i: (i, 0)),
        ),
        compiler_params=pltpu.CompilerParams(
            dimension_semantics=("parallel",),
            vmem_limit_bytes=vmem_limit),
        cost_estimate=pl.CostEstimate(
            flops=flops, transcendentals=transcendentals,
            bytes_accessed=bytes_accessed),
    )(x, w0t, w1t, vecs, b2s)

    return out[:B].reshape(B, OUTPUT_SIZE, K)


def dnn_reference(x, params):
    """Pure-JAX reference mirroring the PyTorch forward (original params)."""
    w0, b0, g0, be0, w1, b1, g1, be1, w2, b2 = params
    B, I_, K = x.shape
    xt = jnp.transpose(x, (0, 2, 1)).reshape(B * K, I_)

    def ln(h, g, b):
        mu = h.mean(-1, keepdims=True)
        var = jnp.square(h - mu).mean(-1, keepdims=True)
        return (h - mu) / jnp.sqrt(var + LN_EPS) * g + b

    h = jnp.maximum(ln(xt @ w0 + b0, g0, be0), 0.0)
    h = jnp.maximum(ln(h @ w1 + b1, g1, be1), 0.0)
    y = h @ w2 + b2 + xt[:, -1:]
    pred = jnp.transpose(y.reshape(B, K, 1), (0, 2, 1))          # (B, 1, K)
    return jax.nn.softmax(pred, axis=-1)


if __name__ == "__main__":
    key = jax.random.PRNGKey(0)
    kx, kp = jax.random.split(key)

    B, K = 2, 128                                                # batch, kspace_size
    x = jax.random.normal(kx, (B, INPUT_SIZE, K), jnp.float32)
    params = init_params(kp)

    packed = pack_params(params)       # hoisted: packed once, reused every call
    out = dnn_forward(x, *packed)
    out = jax.block_until_ready(out)

    ref = dnn_reference(x, params)
    assert out.shape == (B, OUTPUT_SIZE, K)
    assert jnp.allclose(out, ref, atol=1e-5, rtol=1e-5), "mismatch vs reference"

    print("KERNEL_OK")
</pallas_src>

<mosaic_0001>
module attributes {stable_mosaic.version = 11 : i64} {
  func.func @_dnn_kernel(%arg0: i32, %arg1: memref<2x8x128xf32, #tpu.memory_space<vmem>>, %arg2: memref<32x8xf32, #tpu.memory_space<vmem>>, %arg3: memref<32x32xf32, #tpu.memory_space<vmem>>, %arg4: memref<32x8xf32, #tpu.memory_space<vmem>>, %arg5: memref<1xf32, #tpu.memory_space<smem>>, %arg6: memref<2x128xf32, #tpu.memory_space<vmem>>) attributes {dimension_semantics = [#tpu.dimension_semantics<parallel>], iteration_bounds = array<i64: 1>, scalar_prefetch = 0 : i64, scratch_operands = 0 : i64, tpu.core_type = #tpu.core_type<tc>, window_params = [{transform_indices = @transform_0, window_bounds = array<i64: 2, 8, 128>}, {pipeline_mode = #tpu.pipeline_mode<synchronous>, transform_indices = @transform_1, window_bounds = array<i64: 32, 8>}, {pipeline_mode = #tpu.pipeline_mode<synchronous>, transform_indices = @transform_2, window_bounds = array<i64: 32, 32>}, {pipeline_mode = #tpu.pipeline_mode<synchronous>, transform_indices = @transform_3, window_bounds = array<i64: 32, 8>}, {transform_indices = @transform_4, window_bounds = array<i64: 1>}, {transform_indices = @transform_5, window_bounds = array<i64: 2, 128>}]} {
    %c0 = arith.constant 0 : index
    %c0_0 = arith.constant 0 : index
    %0 = vector.load %arg2[%c0, %c0_0] : memref<32x8xf32, #tpu.memory_space<vmem>>, vector<32x8xf32>
    %c0_1 = arith.constant 0 : index
    %c0_2 = arith.constant 0 : index
    %1 = vector.load %arg3[%c0_1, %c0_2] : memref<32x32xf32, #tpu.memory_space<vmem>>, vector<32x32xf32>
    %c0_3 = arith.constant 0 : index
    %c0_4 = arith.constant 0 : index
    %2 = vector.load %arg4[%c0_3, %c0_4] : memref<32x8xf32, #tpu.memory_space<vmem>>, vector<32x1xf32>
    %c0_5 = arith.constant 0 : index
    %c1 = arith.constant 1 : index
    %3 = vector.load %arg4[%c0_5, %c1] : memref<32x8xf32, #tpu.memory_space<vmem>>, vector<32x1xf32>
    %c0_6 = arith.constant 0 : index
    %c2 = arith.constant 2 : index
    %4 = vector.load %arg4[%c0_6, %c2] : memref<32x8xf32, #tpu.memory_space<vmem>>, vector<32x1xf32>
    %c0_7 = arith.constant 0 : index
    %c3 = arith.constant 3 : index
    %5 = vector.load %arg4[%c0_7, %c3] : memref<32x8xf32, #tpu.memory_space<vmem>>, vector<32x1xf32>
    %c0_8 = arith.constant 0 : index
    %c4 = arith.constant 4 : index
    %6 = vector.load %arg4[%c0_8, %c4] : memref<32x8xf32, #tpu.memory_space<vmem>>, vector<32x1xf32>
    %c0_9 = arith.constant 0 : index
    %c5 = arith.constant 5 : index
    %7 = vector.load %arg4[%c0_9, %c5] : memref<32x8xf32, #tpu.memory_space<vmem>>, vector<32x1xf32>
    %c0_10 = arith.constant 0 : index
    %c6 = arith.constant 6 : index
    %8 = vector.load %arg4[%c0_10, %c6] : memref<32x8xf32, #tpu.memory_space<vmem>>, vector<32x1xf32>
    %c0_11 = arith.constant 0 : index
    %9 = memref.load %arg5[%c0_11] : memref<1xf32, #tpu.memory_space<smem>>
    %c0_12 = arith.constant 0 : index
    %c0_13 = arith.constant 0 : index
    %c0_14 = arith.constant 0 : index
    %10 = vector.load %arg1[%c0_12, %c0_13, %c0_14] : memref<2x8x128xf32, #tpu.memory_space<vmem>>, vector<1x8x128xf32>
    %11 = vector.shape_cast %10 : vector<1x8x128xf32> to vector<8x128xf32>
    %cst = arith.constant dense<0.000000e+00> : vector<32x128xf32>
    %12 = tpu.matmul %0, %11, %cst {dimension_numbers = #tpu.dot_dimension_numbers<[1], [0], [0], [1], [0, 0, 1, 1], [], []>} : vector<32x8xf32>, vector<8x128xf32>, vector<32x128xf32> -> vector<32x128xf32>
    %13 = vector.broadcast %3 : vector<32x1xf32> to vector<32x128xf32>
    %14 = arith.addf %12, %13 : vector<32x128xf32>
    %15 = arith.mulf %14, %14 : vector<32x128xf32>
    %cst_15 = arith.constant dense<0.000000e+00> : vector<128xf32>
    %16 = vector.multi_reduction <add>, %15, %cst_15 [0] : vector<32x128xf32> to vector<128xf32>
    %17 = vector.shape_cast %16 : vector<128xf32> to vector<1x128xf32>
    %cst_16 = arith.constant 3.200000e+01 : f32
    %18 = vector.broadcast %cst_16 : f32 to vector<1x128xf32>
    %19 = arith.divf %17, %18 : vector<1x128xf32>
    %cst_17 = arith.constant 9.99999974E-6 : f32
    %20 = vector.broadcast %cst_17 : f32 to vector<1x128xf32>
    %21 = arith.addf %19, %20 : vector<1x128xf32>
    %22 = math.rsqrt %21 : vector<1x128xf32>
    %23 = vector.broadcast %22 : vector<1x128xf32> to vector<32x128xf32>
    %24 = arith.mulf %14, %23 : vector<32x128xf32>
    %25 = vector.broadcast %4 : vector<32x1xf32> to vector<32x128xf32>
    %26 = arith.mulf %24, %25 : vector<32x128xf32>
    %27 = vector.broadcast %5 : vector<32x1xf32> to vector<32x128xf32>
    %28 = arith.addf %26, %27 : vector<32x128xf32>
    %cst_18 = arith.constant 0.000000e+00 : f32
    %29 = vector.broadcast %cst_18 : f32 to vector<32x128xf32>
    %30 = arith.maximumf %28, %29 : vector<32x128xf32>
    %cst_19 = arith.constant dense<0.000000e+00> : vector<32x128xf32>
    %31 = tpu.matmul %1, %30, %cst_19 {dimension_numbers = #tpu.dot_dimension_numbers<[1], [0], [0], [1], [0, 0, 1, 1], [], []>} : vector<32x32xf32>, vector<32x128xf32>, vector<32x128xf32> -> vector<32x128xf32>
    %32 = vector.broadcast %6 : vector<32x1xf32> to vector<32x128xf32>
    %33 = arith.addf %31, %32 : vector<32x128xf32>
    %34 = arith.mulf %33, %33 : vector<32x128xf32>
    %cst_20 = arith.constant dense<0.000000e+00> : vector<128xf32>
    %35 = vector.multi_reduction <add>, %34, %cst_20 [0] : vector<32x128xf32> to vector<128xf32>
    %36 = vector.shape_cast %35 : vector<128xf32> to vector<1x128xf32>
    %cst_21 = arith.constant 3.200000e+01 : f32
    %37 = vector.broadcast %cst_21 : f32 to vector<1x128xf32>
    %38 = arith.divf %36, %37 : vector<1x128xf32>
    %cst_22 = arith.constant 9.99999974E-6 : f32
    %39 = vector.broadcast %cst_22 : f32 to vector<1x128xf32>
    %40 = arith.addf %38, %39 : vector<1x128xf32>
    %41 = math.rsqrt %40 : vector<1x128xf32>
    %42 = vector.broadcast %41 : vector<1x128xf32> to vector<32x128xf32>
    %43 = arith.mulf %33, %42 : vector<32x128xf32>
    %44 = vector.broadcast %7 : vector<32x1xf32> to vector<32x128xf32>
    %45 = arith.mulf %43, %44 : vector<32x128xf32>
    %46 = vector.broadcast %8 : vector<32x1xf32> to vector<32x128xf32>
    %47 = arith.addf %45, %46 : vector<32x128xf32>
    %cst_23 = arith.constant 0.000000e+00 : f32
    %48 = vector.broadcast %cst_23 : f32 to vector<32x128xf32>
    %49 = arith.maximumf %47, %48 : vector<32x128xf32>
    %50 = vector.broadcast %2 : vector<32x1xf32> to vector<32x128xf32>
    %51 = arith.mulf %49, %50 : vector<32x128xf32>
    %cst_24 = arith.constant dense<0.000000e+00> : vector<128xf32>
    %52 = vector.multi_reduction <add>, %51, %cst_24 [0] : vector<32x128xf32> to vector<128xf32>
    %53 = vector.shape_cast %52 : vector<128xf32> to vector<1x128xf32>
    %54 = vector.broadcast %9 : f32 to vector<1x128xf32>
    %55 = arith.addf %53, %54 : vector<1x128xf32>
    %56 = vector.extract_strided_slice %11 {offsets = [7, 0], sizes = [1, 128], strides = [1, 1]} : vector<8x128xf32> to vector<1x128xf32>
    %57 = arith.addf %55, %56 : vector<1x128xf32>
    %c1_25 = arith.constant 1 : index
    %c0_26 = arith.constant 0 : index
    %c0_27 = arith.constant 0 : index
    %58 = vector.load %arg1[%c1_25, %c0_26, %c0_27] : memref<2x8x128xf32, #tpu.memory_space<vmem>>, vector<1x8x128xf32>
    %59 = vector.shape_cast %58 : vector<1x8x128xf32> to vector<8x128xf32>
    %cst_28 = arith.constant dense<0.000000e+00> : vector<32x128xf32>
    %60 = tpu.matmul %0, %59, %cst_28 {dimension_numbers = #tpu.dot_dimension_numbers<[1], [0], [0], [1], [0, 0, 1, 1], [], []>} : vector<32x8xf32>, vector<8x128xf32>, vector<32x128xf32> -> vector<32x128xf32>
    %61 = vector.broadcast %3 : vector<32x1xf32> to vector<32x128xf32>
    %62 = arith.addf %60, %61 : vector<32x128xf32>
    %63 = arith.mulf %62, %62 : vector<32x128xf32>
    %cst_29 = arith.constant dense<0.000000e+00> : vector<128xf32>
    %64 = vector.multi_reduction <add>, %63, %cst_29 [0] : vector<32x128xf32> to vector<128xf32>
    %65 = vector.shape_cast %64 : vector<128xf32> to vector<1x128xf32>
    %cst_30 = arith.constant 3.200000e+01 : f32
    %66 = vector.broadcast %cst_30 : f32 to vector<1x128xf32>
    %67 = arith.divf %65, %66 : vector<1x128xf32>
    %cst_31 = arith.constant 9.99999974E-6 : f32
    %68 = vector.broadcast %cst_31 : f32 to vector<1x128xf32>
    %69 = arith.addf %67, %68 : vector<1x128xf32>
    %70 = math.rsqrt %69 : vector<1x128xf32>
    %71 = vector.broadcast %70 : vector<1x128xf32> to vector<32x128xf32>
    %72 = arith.mulf %62, %71 : vector<32x128xf32>
    %73 = vector.broadcast %4 : vector<32x1xf32> to vector<32x128xf32>
    %74 = arith.mulf %72, %73 : vector<32x128xf32>
    %75 = vector.broadcast %5 : vector<32x1xf32> to vector<32x128xf32>
    %76 = arith.addf %74, %75 : vector<32x128xf32>
    %cst_32 = arith.constant 0.000000e+00 : f32
    %77 = vector.broadcast %cst_32 : f32 to vector<32x128xf32>
    %78 = arith.maximumf %76, %77 : vector<32x128xf32>
    %cst_33 = arith.constant dense<0.000000e+00> : vector<32x128xf32>
    %79 = tpu.matmul %1, %78, %cst_33 {dimension_numbers = #tpu.dot_dimension_numbers<[1], [0], [0], [1], [0, 0, 1, 1], [], []>} : vector<32x32xf32>, vector<32x128xf32>, vector<32x128xf32> -> vector<32x128xf32>
    %80 = vector.broadcast %6 : vector<32x1xf32> to vector<32x128xf32>
    %81 = arith.addf %79, %80 : vector<32x128xf32>
    %82 = arith.mulf %81, %81 : vector<32x128xf32>
    %cst_34 = arith.constant dense<0.000000e+00> : vector<128xf32>
    %83 = vector.multi_reduction <add>, %82, %cst_34 [0] : vector<32x128xf32> to vector<128xf32>
    %84 = vector.shape_cast %83 : vector<128xf32> to vector<1x128xf32>
    %cst_35 = arith.constant 3.200000e+01 : f32
    %85 = vector.broadcast %cst_35 : f32 to vector<1x128xf32>
    %86 = arith.divf %84, %85 : vector<1x128xf32>
    %cst_36 = arith.constant 9.99999974E-6 : f32
    %87 = vector.broadcast %cst_36 : f32 to vector<1x128xf32>
    %88 = arith.addf %86, %87 : vector<1x128xf32>
    %89 = math.rsqrt %88 : vector<1x128xf32>
    %90 = vector.broadcast %89 : vector<1x128xf32> to vector<32x128xf32>
    %91 = arith.mulf %81, %90 : vector<32x128xf32>
    %92 = vector.broadcast %7 : vector<32x1xf32> to vector<32x128xf32>
    %93 = arith.mulf %91, %92 : vector<32x128xf32>
    %94 = vector.broadcast %8 : vector<32x1xf32> to vector<32x128xf32>
    %95 = arith.addf %93, %94 : vector<32x128xf32>
    %cst_37 = arith.constant 0.000000e+00 : f32
    %96 = vector.broadcast %cst_37 : f32 to vector<32x128xf32>
    %97 = arith.maximumf %95, %96 : vector<32x128xf32>
    %98 = vector.broadcast %2 : vector<32x1xf32> to vector<32x128xf32>
    %99 = arith.mulf %97, %98 : vector<32x128xf32>
    %cst_38 = arith.constant dense<0.000000e+00> : vector<128xf32>
    %100 = vector.multi_reduction <add>, %99, %cst_38 [0] : vector<32x128xf32> to vector<128xf32>
    %101 = vector.shape_cast %100 : vector<128xf32> to vector<1x128xf32>
    %102 = vector.broadcast %9 : f32 to vector<1x128xf32>
    %103 = arith.addf %101, %102 : vector<1x128xf32>
    %104 = vector.extract_strided_slice %59 {offsets = [7, 0], sizes = [1, 128], strides = [1, 1]} : vector<8x128xf32> to vector<1x128xf32>
    %105 = arith.addf %103, %104 : vector<1x128xf32>
    %106 = tpu.concatenate %57, %105 in 0 : vector<1x128xf32>, vector<1x128xf32> -> vector<2x128xf32>
    %cst_39 = arith.constant dense<0xFF800000> : vector<2xf32>
    %107 = vector.multi_reduction <maximumf>, %106, %cst_39 [1] : vector<2x128xf32> to vector<2xf32>
    %108 = vector.shape_cast %107 : vector<2xf32> to vector<2x1xf32>
    %109 = vector.broadcast %108 : vector<2x1xf32> to vector<2x128xf32>
    %110 = arith.subf %106, %109 : vector<2x128xf32>
    %111 = math.exp %110 : vector<2x128xf32>
    %cst_40 = arith.constant dense<0.000000e+00> : vector<2xf32>
    %112 = vector.multi_reduction <add>, %111, %cst_40 [1] : vector<2x128xf32> to vector<2xf32>
    %113 = vector.shape_cast %112 : vector<2xf32> to vector<2x1xf32>
    %114 = tpu.reciprocal %113 {approx = true} : vector<2x1xf32> -> vector<2x1xf32>
    %115 = arith.mulf %113, %114 : vector<2x1xf32>
    %cst_41 = arith.constant 2.000000e+00 : f32
    %116 = vector.broadcast %cst_41 : f32 to vector<2x1xf32>
    %117 = arith.subf %116, %115 : vector<2x1xf32>
    %118 = arith.mulf %114, %117 : vector<2x1xf32>
    %119 = vector.broadcast %118 : vector<2x1xf32> to vector<2x128xf32>
    %120 = arith.mulf %111, %119 : vector<2x128xf32>
    %c0_42 = arith.constant 0 : index
    %c0_43 = arith.constant 0 : index
    %121 = vector.load %arg6[%c0_42, %c0_43] : memref<2x128xf32, #tpu.memory_space<vmem>>, vector<2x128xf32>
    tpu.vector_store %arg6[%c0_42, %c0_43], %120 {strides = array<i32>} : memref<2x128xf32, #tpu.memory_space<vmem>>, vector<2x128xf32>,
    return
  }
  func.func @transform_0(%arg0: i32) -> (i32, i32, i32) {
    %c0_i32 = arith.constant 0 : i32
    %c0_i32_0 = arith.constant 0 : i32
    %c0_i32_1 = arith.constant 0 : i32
    return %arg0, %c0_i32, %c0_i32_0 : i32, i32, i32
  }
  func.func @transform_1(%arg0: i32) -> (i32, i32) {
    %c0_i32 = arith.constant 0 : i32
    %c0_i32_0 = arith.constant 0 : i32
    %c0_i32_1 = arith.constant 0 : i32
    return %c0_i32, %c0_i32_0 : i32, i32
  }
  func.func @transform_2(%arg0: i32) -> (i32, i32) {
    %c0_i32 = arith.constant 0 : i32
    %c0_i32_0 = arith.constant 0 : i32
    %c0_i32_1 = arith.constant 0 : i32
    return %c0_i32, %c0_i32_0 : i32, i32
  }
  func.func @transform_3(%arg0: i32) -> (i32, i32) {
    %c0_i32 = arith.constant 0 : i32
    %c0_i32_0 = arith.constant 0 : i32
    %c0_i32_1 = arith.constant 0 : i32
    return %c0_i32, %c0_i32_0 : i32, i32
  }
  func.func @transform_4(%arg0: i32) -> i32 {
    %c0_i32 = arith.constant 0 : i32
    %c0_i32_0 = arith.constant 0 : i32
    return %c0_i32 : i32
  }
  func.func @transform_5(%arg0: i32) -> (i32, i32) {
    %c0_i32 = arith.constant 0 : i32
    %c0_i32_0 = arith.constant 0 : i32
    return %arg0, %c0_i32 : i32, i32
  }
}

</mosaic_0001>

<bundles_post_ra>
// kernel: dnn_forward.1
= control target key start
LH: loop header
LB: loop body
LE: loop exit
PB: predicated region body
PF: predicated region fallthrough
CT: control target
= control target key end

     0   :  { %vm56_vm0 = vcmask 64512   ;;  %v887_v5 = vmov 1   ;;  %s1030_s0 = inlined_call_operand.vmem [shape: f32[2,8,128], index: 0, kind: input, shape index: {}]   ;;  %s1031_s1 = inlined_call_operand.vmem [shape: f32[32,8], index: 1, kind: input, shape index: {}]   ;;  %s1032_s2 = inlined_call_operand.vmem [shape: f32[32,32], index: 2, kind: input, shape index: {}]   ;;  %s1033_s3 = inlined_call_operand.vmem [shape: f32[32,8], index: 3, kind: input, shape index: {}]   ;;  %s1034_s4 = inlined_call_operand.<no memory space> [shape: f32[1], index: 4, kind: input, shape index: {}]   ;;  %s1035_s5 = inlined_call_operand.hbm [shape: f32[2,128], index: 5, kind: output, shape index: {}]  }
   0x1   :  { %v928_v0 = vld [vmem:[%s1030_s0] sm:$0xff]  ;;  %v23_v2 = vld [vmem:[%s1031_s1 + $0x8] sm:$0xff]  ;;  %v24_v4 = vld [vmem:[%s1031_s1 + $0x10] sm:$0xff]  ;;  %833 = vset.pattern.permute.xlu0 %v887_v5 }
   0x2   :  { %v22_v1 = vld [vmem:[%s1031_s1] sm:$0xff]  ;;  %761 = vmatprep.subr.mxu0 %v928_v0  ;;  %v941_v3 = vld [vmem:[%s1030_s0 + $0x8] sm:$0xff]  ;;  %v957_v7 = vld [vmem:[%s1033_s3 + $0x10] sm:$0xff] }
   0x3   :  { %763 = vmatprep.mubr.msk.f32.mxu0 %vm56_vm0, %v22_v1  ;;  %762 = vmatpush3.msra.mxu0 %v928_v0  ;;  %v950_v6 = vld [vmem:[%s1033_s3] sm:$0xff] }
   0x4   :  { %764 = vmatmul.mubr.msk.f32.vlgmr.msra.gmra.mrb[0].mxu0 %vm56_vm0, %v23_v2  ;;  %783 = vmatprep.subr.mxu0 %v941_v3 }
   0x5   :  { %11 = vsyncpa [#allocation4], 0  ;;  %784 = vmatpush3.msra.mxu0 %v941_v3  ;;  %766 = vmatprep.mubr.msk.f32.mxu0 %vm56_vm0, %v24_v4  ;;  %v25_v8 = vld [vmem:[%s1031_s1 + $0x18] sm:$0xff]  ;;  %v31_v9 = vld [vmem:[%s1033_s3 + $0x8] sm:$0xff]  ;;  %v888_v11 = vmov 2   ;;  %v889_v12 = vmov 3  }
   0x6   :  { %38 = vperm.xlu0 %833, %v950_v6   ;;  %834 = vset.pattern.permute.xlu1 %v887_v5  ;;  %v33_v10 = vld [vmem:[%s1033_s3 + $0x18] sm:$0xff]  ;;  %v26_v13 = vld [vmem:[%s1032_s2] sm:$0xff]  ;;  %vm235_vm1 = vcmask 261120   ;;  %v890_v14 = vmov 4   ;;  %v891_v15 = vmov 5   ;;  %v892_v16 = vmov 6  }
   0x7   :  { %48 = vperm.xlu1 %834, %v957_v7   ;;  %777 = vmatprep.mubr.msk.f32.mxu1 %vm235_vm1, %v26_v13  ;;  %v893_v17 = vmov 0   ;;  %vm686_vm2 = vcmask 1040384   ;;  %vm688_vm3 = vcmask 1041408  }
   0x8   :  { %767 = vmatmul.mubr.msk.f32.gmra.mrb[2].mxu0 %vm56_vm0, %v25_v8 }
   0x9   :  { %785 = vmatprep.mubr.msk.f32.mxu0 %vm56_vm0, %v22_v1 }
   0xa   :  { %43 = vperm.xlu0 %833, %v31_v9  }
   0xb   :  { %53 = vperm.xlu1 %834, %v33_v10  }
   0xc   :  { %786 = vmatmul.mubr.msk.f32.vlgmr.msra.gmra.mrb[4].mxu0 %vm56_vm0, %v23_v2 }
   0xd   :  { %788 = vmatprep.mubr.msk.f32.mxu0 %vm56_vm0, %v24_v4 }
   0xe   :  { %835 = vset.pattern.permute.xlu0 %v888_v11 }
   0xf   :  { %836 = vset.pattern.permute.xlu1 %v888_v11  ;;  %176 = vperm.xlu0 %835, %v950_v6  }
  0x10   :  { %789 = vmatmul.mubr.msk.f32.gmra.mrb[6].mxu0 %vm56_vm0, %v25_v8  ;;  %180 = vperm.xlu1 %836, %v31_v9  }
  0x11   :  { %799 = vmatprep.mubr.msk.f32.mxu0 %vm235_vm1, %v26_v13 }
  0x13   :  { %838 = vset.pattern.permute.xlu0 %v889_v12 }
  0x14   :  { %837 = vset.pattern.permute.xlu1 %v889_v12  ;;  %200 = vperm.xlu0 %838, %v31_v9  }
  0x15   :  { %196 = vperm.xlu1 %837, %v950_v6  }
  0x18   :  { %204 = vperm.xlu0 %838, %v957_v7  }
  0x19   :  { %839 = vset.pattern.permute.xlu1 %v888_v11 }
  0x1a   :  { %184 = vperm.xlu1 %839, %v957_v7  }
  0x1c   :  { %841 = vset.pattern.permute.xlu0 %v890_v14 }
  0x1d   :  { %220 = vperm.xlu0 %841, %v950_v6  }
  0x1e   :  { %188 = vperm.xlu1 %839, %v33_v10  }
  0x21   :  { %232 = vperm.xlu0 %841, %v33_v10  }
  0x22   :  { %840 = vset.pattern.permute.xlu1 %v889_v12 }
  0x23   :  { %208 = vperm.xlu1 %840, %v33_v10  }
  0x25   :  { %844 = vset.pattern.permute.xlu0 %v891_v15 }
  0x26   :  { %358 = vperm.xlu0 %844, %v31_v9  }
  0x27   :  { %842 = vset.pattern.permute.xlu1 %v890_v14 }
  0x28   :  { %224 = vperm.xlu1 %842, %v31_v9  }
  0x2a   :  { %846 = vset.pattern.permute.xlu0 %v892_v16 }
  0x2b   :  { %378 = vperm.xlu0 %846, %v31_v9  }
  0x2c   :  { %228 = vperm.xlu1 %842, %v957_v7  }
  0x2f   :  { %386 = vperm.xlu0 %846, %v33_v10  }
  0x30   :  { %843 = vset.pattern.permute.xlu1 %v891_v15 }
  0x31   :  { %354 = vperm.xlu1 %843, %v950_v6  }
  0x33   :  { %850 = vset.pattern.permute.xlu0 %v893_v17 }
  0x34   :  { %402 = vperm.xlu0 %850, %v31_v9  }
  0x35   :  { %362 = vperm.xlu1 %843, %v957_v7  }
  0x39   :  { %845 = vset.pattern.permute.xlu1 %v892_v16 }
  0x3a   :  { %374 = vperm.xlu1 %845, %v950_v6  }
  0x3e   :  { %847 = vset.pattern.permute.xlu1 %v891_v15 }
  0x3f   :  { %366 = vperm.xlu1 %847, %v33_v10  }
  0x43   :  { %848 = vset.pattern.permute.xlu1 %v892_v16 }
  0x44   :  { %382 = vperm.xlu1 %848, %v957_v7  }
  0x48   :  { %849 = vset.pattern.permute.xlu1 %v893_v17 }
  0x49   :  { %398 = vperm.xlu1 %849, %v950_v6  }
  0x4d   :  { %406 = vperm.xlu1 %849, %v957_v7  }
  0x51   :  { %410 = vperm.xlu1 %849, %v33_v10  }
  0x85   :  { %v39_v18 = vpop.permute.xlu0 %38 }
  0x86   :  { %v49_v19 = vpop.permute.xlu1 %48 }
  0x89   :  { %v44_v20 = vpop.permute.xlu0 %43 }
  0x8a   :  { %v54_v26 = vpop.permute.xlu1 %53 }
  0x8e   :  { %v177_v6 = vpop.permute.xlu0 %176 }
  0x8f   :  { %v181_v54 = vpop.permute.xlu1 %180 }
  0x93   :  { %v201_v11 = vpop.permute.xlu0 %200 }
  0x94   :  { %v197_v61 = vpop.permute.xlu1 %196 }
  0x99   :  { %v185_v5 = vpop.permute.xlu1 %184 }
  0x9d   :  { %v189_v10 = vpop.permute.xlu1 %188 }
  0xa2   :  { %v209_v17 = vpop.permute.xlu1 %208 }
  0xd7   :  { %v765_v21 = vpop.f32.mrb[0].mxu0 }
  0xd8   :  { %v141_v22 = vadd.f32 %v765_v21, %v44_v20  ;;  %v135_v23 = vpop.f32.mrb[1].mxu0 }
  0xd9   :  { %v136_v24 = vadd.f32 %v135_v23, %v39_v18 }
  0xda   :  { %v155_v25 = vmul.f32 %v141_v22, %v141_v22 }
  0xdb   :  { %v154_v27 = vmul.f32 %v136_v24, %v136_v24  ;;  %v768_v28 = vpop.f32.mrb[2].mxu0 }
  0xdc   :  { %v145_v29 = vpop.f32.mrb[3].mxu0  ;;  %v151_v31 = vadd.f32 %v768_v28, %v54_v26 }
  0xdd   :  { %v158_v30 = vadd.f32 %v155_v25, %v154_v27  ;;  %v146_v32 = vadd.f32 %v145_v29, %v49_v19 }
  0xde   :  { %v157_v37 = vmul.f32 %v151_v31, %v151_v31 }
  0xdf   :  { %v156_v33 = vmul.f32 %v146_v32, %v146_v32  ;;  %v787_v34 = vpop.f32.mrb[4].mxu0 }
  0xe0   :  { %v503_v35 = vadd.f32 %v787_v34, %v44_v20  ;;  %v497_v36 = vpop.f32.mrb[5].mxu0 }
  0xe1   :  { %v159_v38 = vadd.f32 %v158_v30, %v156_v33  ;;  %v498_v39 = vadd.f32 %v497_v36, %v39_v18  ;;  %v205_v18 = vpop.permute.xlu0 %204 }
  0xe2   :  { %v517_v40 = vmul.f32 %v503_v35, %v503_v35 }
  0xe3   :  { %v160_v41 = vadd.f32 %v159_v38, %v157_v37  ;;  %v516_v42 = vmul.f32 %v498_v39, %v498_v39  ;;  %v790_v43 = vpop.f32.mrb[6].mxu0 }
  0xe4   :  { %v507_v44 = vpop.f32.mrb[7].mxu0  ;;  %v513_v47 = vadd.f32 %v790_v43, %v54_v26 }
  0xe5   :  { %v161_v45 = vrot.slane %v160_v41, 4  ;;  %v520_v46 = vadd.f32 %v517_v40, %v516_v42  ;;  %v508_v48 = vadd.f32 %v507_v44, %v49_v19 }
  0xe6   :  { %v519_v52 = vmul.f32 %v513_v47, %v513_v47 }
  0xe7   :  { %v162_v49 = vadd.f32 %v161_v45, %v160_v41  ;;  %v518_v50 = vmul.f32 %v508_v48, %v508_v48 }
  0xe9   :  { %v163_v51 = vrot.slane %v162_v49, 2  ;;  %v521_v53 = vadd.f32 %v520_v46, %v518_v50 }
  0xeb   :  { %v164_v55 = vadd.f32 %v163_v51, %v162_v49  ;;  %v522_v56 = vadd.f32 %v521_v53, %v519_v52  ;;  %v28_v53 = vld [vmem:[%s1032_s2 + $0x10] sm:$0xff] }
  0xed   :  { %v165_v57 = vrot.slane %v164_v55, 1  ;;  %v523_v58 = vrot.slane %v522_v56, 4 }
  0xef   :  { %v166_v59 = vadd.f32 %v165_v57, %v164_v55  ;;  %v524_v60 = vadd.f32 %v523_v58, %v522_v56  ;;  %v221_v55 = vpop.permute.xlu0 %220  ;;  %v225_v56 = vpop.permute.xlu1 %224 }
  0xf1   :  { %v168_v62 = vmul.f32 0.03125, %v166_v59  ;;  %v525_v63 = vrot.slane %v524_v60, 2 }
  0xf3   :  { %v169_v1 = vadd.f32 1e-05, %v168_v62  ;;  %v526_v2 = vadd.f32 %v525_v63, %v524_v60  ;;  %v229_v63 = vpop.permute.xlu1 %228 }
  0xf5   :  { %851 = vrsqrt.f32 %v169_v1  ;;  %v527_v4 = vrot.slane %v526_v2, 1 }
  0xf7   :  { %v528_v7 = vadd.f32 %v527_v4, %v526_v2 }
  0xf9   :  { %v529_v8 = vmul.f32 0.03125, %v528_v7 }
  0xfb   :  { %v530_v9 = vadd.f32 1e-05, %v529_v8 }
  0xfd   :  { %853 = vrsqrt.f32 %v530_v9  ;;  %v1009_v9 = vpop.permute.xlu1 %354 }
  0xff   :  { %v852_v12 = vpop.eup %851 }
 0x100   :  { %v173_v13 = vmul.f32 %v852_v12, %v146_v32  ;;  %v172_v14 = vmul.f32 %v852_v12, %v141_v22  ;;  %v171_v15 = vmul.f32 %v852_v12, %v136_v24  ;;  %v174_v16 = vmul.f32 %v852_v12, %v151_v31 }
 0x102   :  { %v192_v19 = vmul.f32 %v181_v54, %v172_v14  ;;  %v193_v20 = vmul.f32 %v185_v5, %v173_v13  ;;  %v191_v21 = vmul.f32 %v177_v6, %v171_v15  ;;  %v194_v23 = vmul.f32 %v189_v10, %v174_v16 }
 0x104   :  { %v211_v25 = vadd.f32 %v197_v61, %v191_v21  ;;  %v212_v26 = vadd.f32 %v201_v11, %v192_v19  ;;  %v214_v27 = vadd.f32 %v209_v17, %v194_v23  ;;  %v213_v28 = vadd.f32 %v205_v18, %v193_v20 }
 0x106   :  { %v216_v29 = vmax.f32 %v212_v26, 0.0  ;;  %v218_v30 = vmax.f32 %v214_v27, 0.0  ;;  %v217_v33 = vmax.f32 %v213_v28, 0.0  ;;  %v215_v34 = vmax.f32 %v211_v25, 0.0  ;;  %v363_v28 = vpop.permute.xlu1 %362 }
 0x107   :  { %v854_v36 = vpop.eup %853 }
 0x108   :  { %v534_v37 = vmul.f32 %v854_v36, %v508_v48  ;;  %v533_v32 = vmul.f32 %v854_v36, %v503_v35  ;;  %v532_v22 = vmul.f32 %v854_v36, %v498_v39  ;;  %v535_v24 = vmul.f32 %v854_v36, %v513_v47  ;;  %v27_v47 = vld [vmem:[%s1032_s2 + $0x8] sm:$0xff] }
 0x109   :  { %v805_v31 = vpack.c.bf16 %v216_v29, %v215_v34  ;;  %v809_v38 = vpack.c.bf16 %v218_v30, %v217_v33 }
 0x10a   :  { %v537_v40 = vmul.f32 %v533_v32, %v181_v54  ;;  %v538_v41 = vmul.f32 %v534_v37, %v185_v5  ;;  %v536_v42 = vmul.f32 %v532_v22, %v177_v6  ;;  %v539_v43 = vmul.f32 %v535_v24, %v189_v10  ;;  %v29_v54 = vld [vmem:[%s1032_s2 + $0x18] sm:$0xff]  ;;  %v375_v22 = vpop.permute.xlu1 %374 }
 0x10b   :  { %806 = vmatprep.subr.bf16.mxu1 %v805_v31 }
 0x10c   :  { %v540_v44 = vadd.f32 %v536_v42, %v197_v61  ;;  %v541_v45 = vadd.f32 %v537_v40, %v201_v11  ;;  %v543_v46 = vadd.f32 %v539_v43, %v209_v17  ;;  %v542_v49 = vadd.f32 %v538_v41, %v205_v18  ;;  %808 = vmatpush3.bf16.msra.mxu1 %v805_v31  ;;  %v233_v61 = vpop.permute.xlu0 %232 }
 0x10d   :  { %810 = vmatprep.subr.bf16.mxu1 %v809_v38 }
 0x10e   :  { %v544_v50 = vmax.f32 %v540_v44, 0.0  ;;  %v545_v51 = vmax.f32 %v541_v45, 0.0  ;;  %v547_v52 = vmax.f32 %v543_v46, 0.0  ;;  %v546_v48 = vmax.f32 %v542_v49, 0.0  ;;  %v367_v43 = vpop.permute.xlu1 %366 }
 0x110   :  { %v813_v35 = vpack.c.bf16 %v545_v51, %v544_v50  ;;  %v817_v39 = vpack.c.bf16 %v547_v52, %v546_v48  ;;  %812 = vmatpush3.bf16.msra.mxu1 %v809_v38  ;;  %v359_v46 = vpop.permute.xlu0 %358 }
 0x112   :  { %814 = vmatprep.subr.bf16.mxu0 %v813_v35  ;;  %821 = vmatprep.subr.bf16.mxu1 %v813_v35  ;;  %v383_v51 = vpop.permute.xlu1 %382 }
 0x113   :  { %778 = vmatmul.mubr.msk.f32.vlgmr.msra.gmra.mrb[0].mxu1 %vm235_vm1, %v27_v47  ;;  %816 = vmatpush3.bf16.msra.mxu0 %v813_v35 }
 0x114   :  { %823 = vmatpush3.bf16.msra.mxu1 %v813_v35  ;;  %818 = vmatprep.subr.bf16.mxu0 %v817_v39  ;;  %v379_v48 = vpop.permute.xlu0 %378 }
 0x115   :  { %822 = vmatprep.subr.bf16.mxu1 %v817_v39  ;;  %780 = vmatprep.mubr.msk.f32.mxu1 %vm235_vm1, %v28_v53 }
 0x116   :  { %v399_v35 = vpop.permute.xlu1 %398 }
 0x117   :  { %781 = vmatmul.mubr.msk.f32.gmra.mrb[2].mxu1 %vm235_vm1, %v29_v54  ;;  %820 = vmatpush3.bf16.msra.mxu0 %v817_v39 }
 0x118   :  { %824 = vmatpush3.bf16.msra.mxu1 %v817_v39  ;;  %802 = vmatprep.mubr.msk.f32.mxu1 %vm235_vm1, %v28_v53 }
 0x11a   :  { %800 = vmatmul.mubr.msk.f32.vlgmr.msra.gmra.mrb[8].mxu0 %vm235_vm1, %v27_v47  ;;  %v387_v47 = vpop.permute.xlu0 %386 }
 0x11b   :  { %803 = vmatmul.mubr.msk.f32.vlgmr.msra.gmra.mrb[4].mxu1 %vm235_vm1, %v29_v54 }
 0x1e6   :  { %v779_v57 = vpop.f32.mrb[0].mxu1 }
 0x1e7   :  { %v320_v58 = vadd.f32 %v779_v57, %v225_v56  ;;  %v314_v59 = vpop.f32.mrb[1].mxu1 }
 0x1e8   :  { %v315_v60 = vadd.f32 %v314_v59, %v221_v55 }
 0x1e9   :  { %v334_v62 = vmul.f32 %v320_v58, %v320_v58 }
 0x1ea   :  { %v333_v1 = vmul.f32 %v315_v60, %v315_v60  ;;  %v782_v2 = vpop.f32.mrb[2].mxu1 }
 0x1eb   :  { %v324_v4 = vpop.f32.mrb[3].mxu1  ;;  %v330_v5 = vadd.f32 %v782_v2, %v233_v61 }
 0x1ec   :  { %v337_v6 = vadd.f32 %v334_v62, %v333_v1  ;;  %v325_v7 = vadd.f32 %v324_v4, %v229_v63 }
 0x1ed   :  { %v801_v8 = vpop.f32.mrb[8].mxu0  ;;  %v336_v11 = vmul.f32 %v330_v5, %v330_v5 }
 0x1ee   :  { %v335_v10 = vmul.f32 %v325_v7, %v325_v7  ;;  %v620_v12 = vadd.f32 %v801_v8, %v225_v56  ;;  %v804_v13 = vpop.f32.mrb[4].mxu1  ;;  %v614_v14 = vpop.f32.mrb[9].mxu0 }
 0x1ef   :  { %v615_v15 = vadd.f32 %v614_v14, %v221_v55  ;;  %v624_v16 = vpop.f32.mrb[5].mxu1  ;;  %v630_v20 = vadd.f32 %v804_v13, %v233_v61 }
 0x1f0   :  { %v338_v17 = vadd.f32 %v337_v6, %v335_v10  ;;  %v634_v18 = vmul.f32 %v620_v12, %v620_v12  ;;  %v625_v19 = vadd.f32 %v624_v16, %v229_v63  ;;  %v407_v63 = vpop.permute.xlu1 %406  ;;  %v403_v16 = vpop.permute.xlu0 %402 }
 0x1f1   :  { %v633_v21 = vmul.f32 %v615_v15, %v615_v15  ;;  %v636_v29 = vmul.f32 %v630_v20, %v630_v20 }
 0x1f2   :  { %v339_v23 = vadd.f32 %v338_v17, %v336_v11  ;;  %v635_v26 = vmul.f32 %v625_v19, %v625_v19 }
 0x1f3   :  { %v637_v25 = vadd.f32 %v634_v18, %v633_v21 }
 0x1f4   :  { %v340_v27 = vrot.slane %v339_v23, 4 }
 0x1f5   :  { %v638_v30 = vadd.f32 %v637_v25, %v635_v26 }
 0x1f6   :  { %v341_v33 = vadd.f32 %v340_v27, %v339_v23 }
 0x1f7   :  { %v639_v34 = vadd.f32 %v638_v30, %v636_v29 }
 0x1f8   :  { %v342_v36 = vrot.slane %v341_v33, 2 }
 0x1f9   :  { %v640_v37 = vrot.slane %v639_v34, 4 }
 0x1fa   :  { %v343_v32 = vadd.f32 %v342_v36, %v341_v33 }
 0x1fb   :  { %v641_v24 = vadd.f32 %v640_v37, %v639_v34 }
 0x1fc   :  { %v344_v31 = vrot.slane %v343_v32, 1 }
 0x1fd   :  { %v642_v38 = vrot.slane %v641_v24, 2 }
 0x1fe   :  { %v345_v40 = vadd.f32 %v344_v31, %v343_v32 }
 0x1ff   :  { %v643_v41 = vadd.f32 %v642_v38, %v641_v24 }
 0x200   :  { %v346_v42 = vmul.f32 0.03125, %v345_v40 }
 0x201   :  { %v644_v44 = vrot.slane %v643_v41, 1 }
 0x202   :  { %v347_v45 = vadd.f32 1e-05, %v346_v42 }
 0x203   :  { %v645_v49 = vadd.f32 %v644_v44, %v643_v41 }
 0x204   :  { %855 = vrsqrt.f32 %v347_v45 }
 0x205   :  { %v646_v50 = vmul.f32 0.03125, %v645_v49 }
 0x207   :  { %v647_v52 = vadd.f32 1e-05, %v646_v50 }
 0x209   :  { %857 = vrsqrt.f32 %v647_v52 }
 0x20e   :  { %v856_v39 = vpop.eup %855 }
 0x20f   :  { %v349_v53 = vmul.f32 %v856_v39, %v315_v60  ;;  %v351_v54 = vmul.f32 %v856_v39, %v325_v7  ;;  %v352_v55 = vmul.f32 %v856_v39, %v330_v5  ;;  %v350_v56 = vmul.f32 %v856_v39, %v320_v58 }
 0x211   :  { %v369_v57 = vmul.f32 %v1009_v9, %v349_v53  ;;  %v371_v59 = vmul.f32 %v363_v28, %v351_v54  ;;  %v372_v61 = vmul.f32 %v367_v43, %v352_v55  ;;  %v370_v62 = vmul.f32 %v359_v46, %v350_v56 }
 0x213   :  { %v858_v1 = vpop.eup %857  ;;  %v389_v2 = vadd.f32 %v375_v22, %v369_v57  ;;  %v391_v4 = vadd.f32 %v383_v51, %v371_v59  ;;  %v390_v6 = vadd.f32 %v379_v48, %v370_v62  ;;  %v392_v8 = vadd.f32 %v387_v47, %v372_v61 }
 0x214   :  { %v651_v10 = vmul.f32 %v858_v1, %v625_v19  ;;  %v649_v11 = vmul.f32 %v858_v1, %v615_v15  ;;  %v652_v13 = vmul.f32 %v858_v1, %v630_v20  ;;  %v650_v14 = vmul.f32 %v858_v1, %v620_v12  ;;  %v411_v19 = vpop.permute.xlu1 %410 }
 0x215   :  { %v393_v60 = vmax.f32 %v389_v2, 0.0  ;;  %v395_v7 = vmax.f32 %v391_v4, 0.0  ;;  %v394_v5 = vmax.f32 %v390_v6, 0.0  ;;  %v396_v25 = vmax.f32 %v392_v8, 0.0 }
 0x216   :  { %v653_v58 = vmul.f32 %v649_v11, %v1009_v9  ;;  %v655_v17 = vmul.f32 %v651_v10, %v363_v28  ;;  %v656_v18 = vmul.f32 %v652_v13, %v367_v43  ;;  %v654_v21 = vmul.f32 %v650_v14, %v359_v46 }
 0x217   :  { %v413_v23 = vmul.f32 %v399_v35, %v393_v60  ;;  %v414_v26 = vmul.f32 %v403_v16, %v394_v5  ;;  %v415_v15 = vmul.f32 %v407_v63, %v395_v7  ;;  %v416_v37 = vmul.f32 %v411_v19, %v396_v25 }
 0x218   :  { %v657_v27 = vadd.f32 %v653_v58, %v375_v22  ;;  %v659_v29 = vadd.f32 %v655_v17, %v383_v51  ;;  %v658_v30 = vadd.f32 %v654_v21, %v379_v48  ;;  %v660_v33 = vadd.f32 %v656_v18, %v387_v47 }
 0x219   :  { %v417_v20 = vadd.f32 %v414_v26, %v413_v23 }
 0x21a   :  { %v661_v12 = vmax.f32 %v657_v27, 0.0  ;;  %v663_v34 = vmax.f32 %v659_v29, 0.0  ;;  %v662_v36 = vmax.f32 %v658_v30, 0.0  ;;  %v664_v9 = vmax.f32 %v660_v33, 0.0 }
 0x21b   :  { %v418_v32 = vadd.f32 %v417_v20, %v415_v15 }
 0x21c   :  { %v665_v24 = vmul.f32 %v661_v12, %v399_v35  ;;  %v666_v28 = vmul.f32 %v662_v36, %v403_v16  ;;  %v667_v38 = vmul.f32 %v663_v34, %v407_v63  ;;  %v668_v42 = vmul.f32 %v664_v9, %v411_v19 }
 0x21d   :  { %v419_v31 = vadd.f32 %v418_v32, %v416_v37  ;;  %v426_v35 = vstv %s1034_s4  ;;  %s894_s4 = smov [#allocation3]  }
 0x21e   :  { %v669_v40 = vadd.f32 %v666_v28, %v665_v24  ;;  %s710_s19 = sshll.u32 %s894_s4, 4  ;;  %s711_s19 = int_to_ptr.vmem [resolvable:$true] %s710_s19 }
 0x21f   :  { %v420_v41 = vrot.slane %v419_v31, 4  ;;  %s863_s20 = scalar_lea.vmem %s711_s19, 32  ;;  %p868_p1 = scmp.lt.s32.totalorder %s711_s19, %s711_s19 }
 0x220   :  { %v670_v22 = vadd.f32 %v669_v40, %v667_v38  ;;  %p864_p0 = scmp.ne.s32.totalorder %s711_s19, %s863_s20  ;;  %p869_p2 = scmp.lt.s32.totalorder %s863_s20, %s863_s20 }
 0x221   :  { %v421_v43 = vadd.f32 %v420_v41, %v419_v31 }
 0x222   :  { %v671_v44 = vadd.f32 %v670_v22, %v668_v42  ;;  %p870_p3 = por %p869_p2, %p868_p1 }
 0x223   :  { %v422_v45 = vrot.slane %v421_v43, 2 }
 0x224   :  { %v672_v46 = vrot.slane %v671_v44, 4  ;;  %p871_p4 = pnand %p870_p3, %p864_p0 }
 0x225   :  { %v423_v49 = vadd.f32 %v422_v45, %v421_v43 }
 0x226   :  { %v673_v50 = vadd.f32 %v672_v46, %v671_v44 }
 0x227   :  { %v424_v51 = vrot.slane %v423_v49, 1 }
 0x228   :  { %v674_v52 = vrot.slane %v673_v50, 2 }
 0x229   :  { %v425_v48 = vadd.f32 %v424_v51, %v423_v49 }
 0x22a   :  { %v675_v39 = vadd.f32 %v674_v52, %v673_v50 }
 0x22b   :  { %v427_v47 = vadd.f32 %v426_v35, %v425_v48 }
 0x22c   :  { %v676_v53 = vrot.slane %v675_v39, 1 }
 0x22d   :  { %v428_v55 = vadd.f32 %v427_v47, %v928_v0 }
 0x22e   :  { %v677_v54 = vadd.f32 %v676_v53, %v675_v39 }
 0x22f   :  { %v681_v59 = vrot.slane %v428_v55, 7 }
 0x230   :  { %v678_v56 = vadd.f32 %v677_v54, %v426_v35 }
 0x232   :  { %v679_v57 = vadd.f32 %v941_v3, %v678_v56 }
 0x234   :  { %v684_v61 = vrot.slane %v679_v57, 6 }
 0x236   :  { %v687_v62 = vsel %vm686_vm2, %v681_v59, %v684_v61 }
 0x237   :  { %v689_v63 = vsel %vm688_vm3, %v687_v62, -inf }
 0x238   :  { %690 = vmax.xlane.f32.xlu0 %v689_v63 }
 0x2c5   :  { %v691_v1 = vpop.xlane.xlu0 %690 }
 0x2c6   :  { %v692_v2 = vsub.f32 %v687_v62, %v691_v1 }
 0x2c8   :  { %v693_v4 = vmul.f32 1.442695, %v692_v2 }
 0x2ca   :  { %859 = vpow2.f32 %v693_v4 }
 0x2d4   :  { %v860_v6 = vpop.eup %859 }
 0x2d5   :  { %v695_v8 = vsel %vm688_vm3, %v860_v6, 0.0 }
 0x2d6   :  { %696 = vadd.xlane.f32.xlu1 %v695_v8 }
 0x363   :  { %v697_v10 = vpop.xlane.xlu1 %696 }
 0x364   :  { %861 = vrcp.f32 %v697_v10 }
 0x36e   :  { %v862_v0 = vpop.eup %861 }
 0x36f   :  { %v699_v11 = vmul.f32 %v862_v0, %v697_v10 }
 0x371   :  { %v700_v13 = vsub.f32 2.0, %v699_v11 }
 0x373   :  { %v701_v3 = vmul.f32 %v862_v0, %v700_v13 }
 0x375   :  { %v702_v14 = vmul.f32 %v860_v6, %v701_v3 }
 0x377   :  { %703 = vst [vmem:[#allocation3] sm:$0x3] %v702_v14 }
 0x378   :  { %874 = shalt.err (!%p871_p4)
}
 0x379   :  { %s875_s23 = scalar_lea.hbm %s1035_s5, 32 }
 0x37a   :  { %p876_p5 = scmp.ne.s32.totalorder %s1035_s5, %s875_s23  ;;  %p879_p6 = scmp.lt.u32.totalorder %s875_s23, %s1035_s5 }
 0x37c   :  { %p881_p7 = pnand %p879_p6, %p876_p5 }
 0x37e   :  { %884 = shalt.err (!%p881_p7)
}
 0x37f   :  { %713 = dma.vmem_to_hbm [thread:$0]  %s711_s19, 32, %s1035_s5, [#allocation4]  }
 0x380   :  { %885 = dma.done.wait [#allocation4], 32  }
 0x381   :  { %886 = vsyncadd [#allocation4], 4294967264 }
 0x382   :  { %717 = vsyncpa [#allocation4], 1 }

</bundles_post_ra>
